<compile_context>
chip_gen: v6e
topology: v6e:2x2x1
jax: 0.10.0
libtpu: 0.0.40
codegen_flags: <defaults>
</compile_context>

<pallas_src>
import functools

import jax
import jax.numpy as jnp
from jax.experimental import pallas as pl
from jax.experimental.pallas import tpu as pltpu


def _round_up(x, m):
    return (x + m - 1) // m * m


def _gru_step_kernel(h_ref, x_ref, wzr_h_ref, wx_all_ref, wt_h_ref, out_ref,
                     *, hidden_pad):
    Hp = hidden_pad
    wdt = wzr_h_ref.dtype

    h_f32 = h_ref[...].astype(jnp.float32)   # f32 h for the gate elementwise math
    h_mm = h_ref[...].astype(wdt)            # matmul operand in weight dtype
    x_mm = x_ref[...]                        # already in weight dtype

    # Input contribution to all three gates in one wide MXU pass: (TB, 3*Hp).
    x_all = jnp.dot(x_mm, wx_all_ref[...], preferred_element_type=jnp.float32)

    # Fused z/r pre-activation: h @ [Wz_h | Wr_h] -> (TB, 2*Hp), one sigmoid (EUP).
    # Slices below are all 128-lane aligned (no relayout copies).
    zr = jax.nn.sigmoid(
        jnp.dot(h_mm, wzr_h_ref[...], preferred_element_type=jnp.float32)
        + x_all[:, :2 * Hp])
    z = zr[:, :Hp]
    r = zr[:, Hp:]

    # t = tanh((r*h) @ Wt_h + x @ Wt_x)
    t = jnp.tanh(
        jnp.dot((r * h_f32).astype(wdt), wt_h_ref[...],
                preferred_element_type=jnp.float32)
        + x_all[:, 2 * Hp:])

    # h' = (1-z)*h + z*t  ==  h + z*(t - h); padded lanes: h=0, t=0 -> out=0.
    out_ref[...] = (h_f32 + z * (t - h_f32)).astype(out_ref.dtype)


def init_torch_weights(key, hidden_size, input_size, dtype=jnp.float32):
    """nn.Linear(H+I, H, bias=False) default init: U(-1/sqrt(fan_in), +1/sqrt(fan_in)).

    Returns the three weights in PyTorch layout (H, H+I)."""
    fan_in = hidden_size + input_size
    bound = 1.0 / (fan_in ** 0.5)
    keys = jax.random.split(key, 3)
    return {name: jax.random.uniform(k, (hidden_size, fan_in), dtype=dtype,
                                     minval=-bound, maxval=bound)
            for k, name in zip(keys, ("z", "r", "t"))}


def pack_params(torch_weights, hidden_size, input_size, dtype=jnp.bfloat16):
    """Split / transpose / zero-pad / fuse the PyTorch (H, H+I) weights for the kernel."""
    H, I = hidden_size, input_size
    Hp, Ip = _round_up(H, 128), _round_up(I, 128)

    def pad(w, rows, cols):
        return jnp.zeros((rows, cols), w.dtype).at[:w.shape[0], :w.shape[1]].set(w)

    def split(w):                       # torch layout: (H, H+I)
        return w[:, :H].T, w[:, H:].T   # transposed hidden part (H,H), input part (I,H)

    wz_h, wz_x = split(torch_weights["z"])
    wr_h, wr_x = split(torch_weights["r"])
    wt_h, wt_x = split(torch_weights["t"])

    return {
        "wzr_h": jnp.concatenate(
            [pad(wz_h, Hp, Hp), pad(wr_h, Hp, Hp)], axis=1).astype(dtype),
        "wx_all": jnp.concatenate(
            [pad(wz_x, Ip, Hp), pad(wr_x, Ip, Hp), pad(wt_x, Ip, Hp)],
            axis=1).astype(dtype),
        "wt_h": pad(wt_h, Hp, Hp).astype(dtype),
        "H": H, "I": I, "Hp": Hp, "Ip": Ip,
    }


def gru_step(h_state, inp, packed, *, block_b=256):
    """h_state: (B, H), inp: (B, I); packed: output of pack_params."""
    B, H = h_state.shape
    _, I = inp.shape
    Hp, Ip = packed["Hp"], packed["Ip"]
    wdt = packed["wzr_h"].dtype
    w_isz = jnp.dtype(wdt).itemsize
    h_isz = jnp.dtype(h_state.dtype).itemsize

    # Batch tile: even split across tiles (minimizes row padding), sublane-aligned.
    num_tiles = -(-B // block_b)
    TB = _round_up(-(-B // num_tiles), 8)
    Bp = TB * num_tiles

    # Zero-pad activations to lane/sublane-aligned shapes (skip when already aligned).
    if Bp == B and Hp == H:
        h_pad = h_state
    else:
        h_pad = jnp.zeros((Bp, Hp), h_state.dtype).at[:B, :H].set(h_state)
    x_cast = inp.astype(wdt)
    if Bp == B and Ip == I:
        x_pad = x_cast
    else:
        x_pad = jnp.zeros((Bp, Ip), wdt).at[:B, :I].set(x_cast)

    # Conservative VMEM budget (weights counted double-buffered); raise the scoped
    # limit only when needed so small shapes keep the compiler defaults.
    weight_bytes = (Hp * 2 * Hp + Ip * 3 * Hp + Hp * Hp) * w_isz
    act_bytes = 2 * TB * (Hp * h_isz + Ip * w_isz + Hp * h_isz)
    vmem_needed = 2 * weight_bytes + act_bytes
    compiler_kwargs = {"dimension_semantics": ("parallel",)}
    if vmem_needed > 24 * 1024 * 1024:
        compiler_kwargs["vmem_limit_bytes"] = min(
            int(vmem_needed * 1.2) + (2 << 20), 64 * 1024 * 1024)

    out = pl.pallas_call(
        functools.partial(_gru_step_kernel, hidden_pad=Hp),
        out_shape=jax.ShapeDtypeStruct((Bp, Hp), h_state.dtype),
        grid_spec=pltpu.PrefetchScalarGridSpec(
            num_scalar_prefetch=0,
            grid=(Bp // TB,),
            in_specs=[
                pl.BlockSpec((TB, Hp), lambda b: (b, 0)),       # h tile
                pl.BlockSpec((TB, Ip), lambda b: (b, 0)),       # x tile
                pl.BlockSpec((Hp, 2 * Hp), lambda b: (0, 0)),   # [Wz_h | Wr_h] (resident)
                pl.BlockSpec((Ip, 3 * Hp), lambda b: (0, 0)),   # [Wz_x|Wr_x|Wt_x] (resident)
                pl.BlockSpec((Hp, Hp), lambda b: (0, 0)),       # Wt_h (resident)
            ],
            out_specs=pl.BlockSpec((TB, Hp), lambda b: (b, 0)),
        ),
        compiler_params=pltpu.CompilerParams(**compiler_kwargs),
    )(h_pad, x_pad, packed["wzr_h"], packed["wx_all"], packed["wt_h"])

    return out[:B, :H]


def gru_step_ref(h_state, inp, torch_weights):
    """Pure-JAX replica of the PyTorch forward (f32, torch weight layout)."""
    hx = jnp.concatenate([h_state, inp], axis=-1)
    z = jax.nn.sigmoid(hx @ torch_weights["z"].T)
    r = jax.nn.sigmoid(hx @ torch_weights["r"].T)
    rhx = jnp.concatenate([r * h_state, inp], axis=-1)
    t = jnp.tanh(rhx @ torch_weights["t"].T)
    return (1.0 - z) * h_state + z * t


if __name__ == "__main__":
    B, H, I = 8, 32, 16  # batch, hidden_size, input_size

    key = jax.random.PRNGKey(0)
    k_h, k_x, k_w = jax.random.split(key, 3)
    h_state = jax.random.normal(k_h, (B, H), dtype=jnp.float32)
    inp = jax.random.normal(k_x, (B, I), dtype=jnp.float32)
    torch_w = init_torch_weights(k_w, H, I)

    ref = gru_step_ref(h_state, inp, torch_w)

    # 1) f32 weights: structural check against the exact PyTorch math.
    packed_f32 = pack_params(torch_w, H, I, dtype=jnp.float32)
    out_f32 = jax.block_until_ready(gru_step(h_state, inp, packed_f32))
    assert out_f32.shape == (B, H)
    assert jnp.allclose(out_f32, ref, atol=1e-4, rtol=1e-4), (
        "f32 kernel mismatch vs reference: "
        f"max abs err {float(jnp.max(jnp.abs(out_f32 - ref)))}")

    # 2) bf16 weights (default fast path): loose tolerance vs the f32 reference.
    out_bf16 = jax.block_until_ready(
        gru_step(h_state, inp, pack_params(torch_w, H, I)))
    assert out_bf16.shape == (B, H)
    assert jnp.allclose(out_bf16, ref, atol=5e-2, rtol=5e-2), (
        "bf16 kernel mismatch vs reference: "
        f"max abs err {float(jnp.max(jnp.abs(out_bf16 - ref)))}")

    # 3) non-sublane-aligned batch (exercises the row-padding path).
    B2 = 5
    ref2 = gru_step_ref(h_state[:B2], inp[:B2], torch_w)
    out2 = jax.block_until_ready(gru_step(h_state[:B2], inp[:B2], packed_f32))
    assert out2.shape == (B2, H)
    assert jnp.allclose(out2, ref2, atol=1e-4, rtol=1e-4), (
        "padded-batch kernel mismatch vs reference: "
        f"max abs err {float(jnp.max(jnp.abs(out2 - ref2)))}")

    print("KERNEL_OK")
</pallas_src>

<mosaic_0001>
module attributes {stable_mosaic.version = 11 : i64} {
  func.func @_gru_step_kernel(%arg0: i32, %arg1: memref<8x128xf32, #tpu.memory_space<vmem>>, %arg2: memref<8x128xf32, #tpu.memory_space<vmem>>, %arg3: memref<128x256xf32, #tpu.memory_space<vmem>>, %arg4: memref<128x384xf32, #tpu.memory_space<vmem>>, %arg5: memref<128x128xf32, #tpu.memory_space<vmem>>, %arg6: memref<8x128xf32, #tpu.memory_space<vmem>>) attributes {dimension_semantics = [#tpu.dimension_semantics<parallel>], iteration_bounds = array<i64: 1>, scalar_prefetch = 0 : i64, scratch_operands = 0 : i64, tpu.core_type = #tpu.core_type<tc>, window_params = [{transform_indices = @transform_0, window_bounds = array<i64: 8, 128>}, {transform_indices = @transform_1, window_bounds = array<i64: 8, 128>}, {pipeline_mode = #tpu.pipeline_mode<synchronous>, transform_indices = @transform_2, window_bounds = array<i64: 128, 256>}, {pipeline_mode = #tpu.pipeline_mode<synchronous>, transform_indices = @transform_3, window_bounds = array<i64: 128, 384>}, {pipeline_mode = #tpu.pipeline_mode<synchronous>, transform_indices = @transform_4, window_bounds = array<i64: 128, 128>}, {transform_indices = @transform_5, window_bounds = array<i64: 8, 128>}]} {
    %c0 = arith.constant 0 : index
    %c0_0 = arith.constant 0 : index
    %0 = vector.load %arg1[%c0, %c0_0] : memref<8x128xf32, #tpu.memory_space<vmem>>, vector<8x128xf32>
    %c0_1 = arith.constant 0 : index
    %c0_2 = arith.constant 0 : index
    %1 = vector.load %arg1[%c0_1, %c0_2] : memref<8x128xf32, #tpu.memory_space<vmem>>, vector<8x128xf32>
    %c0_3 = arith.constant 0 : index
    %c0_4 = arith.constant 0 : index
    %2 = vector.load %arg2[%c0_3, %c0_4] : memref<8x128xf32, #tpu.memory_space<vmem>>, vector<8x128xf32>
    %c0_5 = arith.constant 0 : index
    %c0_6 = arith.constant 0 : index
    %3 = vector.load %arg4[%c0_5, %c0_6] : memref<128x384xf32, #tpu.memory_space<vmem>>, vector<128x384xf32>
    %cst = arith.constant dense<0.000000e+00> : vector<8x384xf32>
    %4 = tpu.matmul %2, %3, %cst {dimension_numbers = #tpu.dot_dimension_numbers<[1], [0], [0], [1], [0, 0, 1, 1], [], []>} : vector<8x128xf32>, vector<128x384xf32>, vector<8x384xf32> -> vector<8x384xf32>
    %c0_7 = arith.constant 0 : index
    %c0_8 = arith.constant 0 : index
    %5 = vector.load %arg3[%c0_7, %c0_8] : memref<128x256xf32, #tpu.memory_space<vmem>>, vector<128x256xf32>
    %cst_9 = arith.constant dense<0.000000e+00> : vector<8x256xf32>
    %6 = tpu.matmul %1, %5, %cst_9 {dimension_numbers = #tpu.dot_dimension_numbers<[1], [0], [0], [1], [0, 0, 1, 1], [], []>} : vector<8x128xf32>, vector<128x256xf32>, vector<8x256xf32> -> vector<8x256xf32>
    %7 = vector.extract_strided_slice %4 {offsets = [0, 0], sizes = [8, 256], strides = [1, 1]} : vector<8x384xf32> to vector<8x256xf32>
    %8 = arith.addf %6, %7 : vector<8x256xf32>
    %9 = arith.negf %8 : vector<8x256xf32>
    %10 = math.exp %9 : vector<8x256xf32>
    %cst_10 = arith.constant 1.000000e+00 : f32
    %11 = vector.broadcast %cst_10 : f32 to vector<8x256xf32>
    %12 = arith.addf %11, %10 : vector<8x256xf32>
    %13 = arith.divf %11, %12 : vector<8x256xf32>
    %14 = vector.extract_strided_slice %13 {offsets = [0, 0], sizes = [8, 128], strides = [1, 1]} : vector<8x256xf32> to vector<8x128xf32>
    %15 = vector.extract_strided_slice %13 {offsets = [0, 128], sizes = [8, 128], strides = [1, 1]} : vector<8x256xf32> to vector<8x128xf32>
    %16 = arith.mulf %15, %0 : vector<8x128xf32>
    %c0_11 = arith.constant 0 : index
    %c0_12 = arith.constant 0 : index
    %17 = vector.load %arg5[%c0_11, %c0_12] : memref<128x128xf32, #tpu.memory_space<vmem>>, vector<128x128xf32>
    %cst_13 = arith.constant dense<0.000000e+00> : vector<8x128xf32>
    %18 = tpu.matmul %16, %17, %cst_13 {dimension_numbers = #tpu.dot_dimension_numbers<[1], [0], [0], [1], [0, 0, 1, 1], [], []>} : vector<8x128xf32>, vector<128x128xf32>, vector<8x128xf32> -> vector<8x128xf32>
    %19 = vector.extract_strided_slice %4 {offsets = [0, 256], sizes = [8, 128], strides = [1, 1]} : vector<8x384xf32> to vector<8x128xf32>
    %20 = arith.addf %18, %19 : vector<8x128xf32>
    %21 = math.tanh %20 : vector<8x128xf32>
    %22 = arith.subf %21, %0 : vector<8x128xf32>
    %23 = arith.mulf %14, %22 : vector<8x128xf32>
    %24 = arith.addf %0, %23 : vector<8x128xf32>
    %c0_14 = arith.constant 0 : index
    %c0_15 = arith.constant 0 : index
    %25 = vector.load %arg6[%c0_14, %c0_15] : memref<8x128xf32, #tpu.memory_space<vmem>>, vector<8x128xf32>
    tpu.vector_store %arg6[%c0_14, %c0_15], %24 {strides = array<i32>} : memref<8x128xf32, #tpu.memory_space<vmem>>, vector<8x128xf32>,
    return
  }
  func.func @transform_0(%arg0: i32) -> (i32, i32) {
    %c0_i32 = arith.constant 0 : i32
    %c0_i32_0 = arith.constant 0 : i32
    return %arg0, %c0_i32 : i32, i32
  }
  func.func @transform_1(%arg0: i32) -> (i32, i32) {
    %c0_i32 = arith.constant 0 : i32
    %c0_i32_0 = arith.constant 0 : i32
    return %arg0, %c0_i32 : i32, i32
  }
  func.func @transform_2(%arg0: i32) -> (i32, i32) {
    %c0_i32 = arith.constant 0 : i32
    %c0_i32_0 = arith.constant 0 : i32
    %c0_i32_1 = arith.constant 0 : i32
    return %c0_i32, %c0_i32_0 : i32, i32
  }
  func.func @transform_3(%arg0: i32) -> (i32, i32) {
    %c0_i32 = arith.constant 0 : i32
    %c0_i32_0 = arith.constant 0 : i32
    %c0_i32_1 = arith.constant 0 : i32
    return %c0_i32, %c0_i32_0 : i32, i32
  }
  func.func @transform_4(%arg0: i32) -> (i32, i32) {
    %c0_i32 = arith.constant 0 : i32
    %c0_i32_0 = arith.constant 0 : i32
    %c0_i32_1 = arith.constant 0 : i32
    return %c0_i32, %c0_i32_0 : i32, i32
  }
  func.func @transform_5(%arg0: i32) -> (i32, i32) {
    %c0_i32 = arith.constant 0 : i32
    %c0_i32_0 = arith.constant 0 : i32
    return %arg0, %c0_i32 : i32, i32
  }
}

</mosaic_0001>

<bundles_post_ra>
// kernel: tpu_custom_call.1
= control target key start
LH: loop header
LB: loop body
LE: loop exit
PB: predicated region body
PF: predicated region fallthrough
CT: control target
= control target key end

     0   :  { %10 = vsyncpa [#allocation3], 0  ;;  %s866_s0 = inlined_call_operand.hbm [shape: f32[8,128], index: 0, kind: input, shape index: {}]   ;;  %s867_s1 = inlined_call_operand.hbm [shape: f32[8,128], index: 1, kind: input, shape index: {}]   ;;  %s868_s2 = inlined_call_operand.hbm [shape: f32[128,256], index: 2, kind: input, shape index: {}]   ;;  %s869_s3 = inlined_call_operand.hbm [shape: f32[128,384], index: 3, kind: input, shape index: {}]   ;;  %s870_s4 = inlined_call_operand.hbm [shape: f32[128,128], index: 4, kind: input, shape index: {}]   ;;  %s871_s5 = inlined_call_operand.hbm [shape: f32[8,128], index: 5, kind: output, shape index: {}]  }
   0x1   :  { %11 = vsyncpa [#allocation6], 0 }
   0x2   :  { %12 = vsyncpa [#allocation9], 0 }
   0x3   :  { %13 = vsyncpa [#allocation4], 0  ;;  %s758_s18 = smov [#allocation5]   ;;  %s759_s20 = smov [#allocation8]  }
   0x4   :  { %s30_s19 = sshll.u32 %s758_s18, 4  ;;  %s51_s21 = sshll.u32 %s759_s20, 4  ;;  %s31_s19 = int_to_ptr.vmem [resolvable:$true] %s30_s19  ;;  %s52_s21 = int_to_ptr.vmem [resolvable:$true] %s51_s21 }
   0x5   :  { %s638_s22 = scalar_lea.vmem %s31_s19, 128  ;;  %p643_p1 = scmp.lt.s32.totalorder %s31_s19, %s31_s19 }
   0x6   :  { %p639_p0 = scmp.ne.s32.totalorder %s31_s19, %s638_s22  ;;  %p644_p2 = scmp.lt.s32.totalorder %s638_s22, %s638_s22 }
   0x8   :  { %p645_p3 = por %p644_p2, %p643_p1 }
   0xa   :  { %p646_p4 = pnand %p645_p3, %p639_p0 }
   0xc   :  { %649 = shalt.err (!%p646_p4)
}
   0xd   :  { %33 = dma.hbm_to_vmem [thread:$0]  %s867_s1, 128, %s31_s19, [#allocation6]  }
   0xe   :  { %s658_s25 = scalar_lea.vmem %s52_s21, 6144  ;;  %p663_p6 = scmp.lt.s32.totalorder %s52_s21, %s52_s21 }
   0xf   :  { %p659_p5 = scmp.ne.s32.totalorder %s52_s21, %s658_s25  ;;  %p664_p7 = scmp.lt.s32.totalorder %s658_s25, %s658_s25 }
  0x11   :  { %p665_p8 = por %p664_p7, %p663_p6 }
  0x13   :  { %p666_p9 = pnand %p665_p8, %p659_p5 }
  0x15   :  { %669 = shalt.err (!%p666_p9)
}
  0x16   :  { %s760_s26 = smov 384   ;;  %s761_s27 = smov 24  }
  0x17   :  { %57 = dma.hbm_to_vmem [thread:$0]  %s869_s3, 6144, %s52_s21, [#allocation9], %s760_s26, %s760_s26, %s761_s27  }
  0x18   :  { %s762_s30 = smov [#allocation2]   ;;  %s763_s7 = smov [#allocation7]  }
  0x19   :  { %s20_s6 = sshll.u32 %s762_s30, 4  ;;  %s39_s8 = sshll.u32 %s763_s7, 4  ;;  %s21_s6 = int_to_ptr.vmem [resolvable:$true] %s20_s6  ;;  %s40_s8 = int_to_ptr.vmem [resolvable:$true] %s39_s8 }
  0x1a   :  { %s678_s1 = scalar_lea.vmem %s21_s6, 128  ;;  %p683_p11 = scmp.lt.s32.totalorder %s21_s6, %s21_s6 }
  0x1b   :  { %p679_p10 = scmp.ne.s32.totalorder %s21_s6, %s678_s1  ;;  %p684_p12 = scmp.lt.s32.totalorder %s678_s1, %s678_s1 }
  0x1d   :  { %p685_p13 = por %p684_p12, %p683_p11 }
  0x1f   :  { %p686_p0 = pnand %p685_p13, %p679_p10 }
  0x21   :  { %689 = shalt.err (!%p686_p0)
}
  0x22   :  { %23 = dma.hbm_to_vmem [thread:$0]  %s866_s0, 128, %s21_s6, [#allocation3]  }
  0x23   :  { %s698_s11 = scalar_lea.vmem %s40_s8, 4096  ;;  %p703_p2 = scmp.lt.s32.totalorder %s40_s8, %s40_s8 }
  0x24   :  { %p699_p1 = scmp.ne.s32.totalorder %s40_s8, %s698_s11  ;;  %p704_p3 = scmp.lt.s32.totalorder %s698_s11, %s698_s11 }
  0x26   :  { %p705_p4 = por %p704_p3, %p703_p2 }
  0x28   :  { %p706_p5 = pnand %p705_p4, %p699_p1 }
  0x2a   :  { %709 = shalt.err (!%p706_p5)
}
  0x2b   :  { %s764_s3 = smov 256   ;;  %s765_s12 = smov 16  }
  0x2c   :  { %45 = dma.hbm_to_vmem [thread:$0]  %s868_s2, 4096, %s40_s8, [#allocation6], %s764_s3, %s764_s3, %s765_s12  }
  0x2d   :  { %s766_s15 = smov [#allocation10]  }
  0x2e   :  { %s63_s16 = sshll.u32 %s766_s15, 4  ;;  %s64_s16 = int_to_ptr.vmem [resolvable:$true] %s63_s16 }
  0x2f   :  { %s718_s17 = scalar_lea.vmem %s64_s16, 2048  ;;  %p723_p7 = scmp.lt.s32.totalorder %s64_s16, %s64_s16 }
  0x30   :  { %p719_p6 = scmp.ne.s32.totalorder %s64_s16, %s718_s17  ;;  %p724_p8 = scmp.lt.s32.totalorder %s718_s17, %s718_s17 }
  0x32   :  { %p725_p9 = por %p724_p8, %p723_p7 }
  0x34   :  { %p726_p10 = pnand %p725_p9, %p719_p6 }
  0x36   :  { %729 = shalt.err (!%p726_p10)
}
  0x37   :  { %s767_s0 = smov 128   ;;  %s768_s18 = smov 8  }
  0x38   :  { %69 = dma.hbm_to_vmem [thread:$0]  %s870_s4, 2048, %s64_s16, [#allocation9], %s767_s0, %s767_s0, %s768_s18  }
  0x39   :  { %750 = dma.done.wait [#allocation3], 128  }
  0x3a   :  { %751 = vsyncadd [#allocation3], 4294967168 }
  0x3b   :  { %752 = dma.done.wait [#allocation6], 4224  }
  0x3c   :  { %753 = vsyncadd [#allocation6], 4294963072 }
  0x3d   :  { %754 = dma.done.wait [#allocation9], 8192  }
  0x3e   :  { %755 = vsyncadd [#allocation9], 4294959104  ;;  %v769_v0 = vmov 0.0   ;;  %v133_v1 = vld [vmem:[#allocation8 + $0x170] sm:$0xff]  ;;  %v132_v2 = vld [vmem:[#allocation8 + $0x168] sm:$0xff]  ;;  %vm770_vm0 = vmmov 0  }
  0x3f   :  { %199 = vmatprep.mubr.f32.mxu0 %v769_v0  ;;  %536 = vmatprep.subr.mxu1 %v769_v0  ;;  %v130_v3 = vld [vmem:[#allocation8 + $0x158] sm:$0xff]  ;;  %v129_v4 = vld [vmem:[#allocation8 + $0x150] sm:$0xff]  ;;  %v127_v5 = vld [vmem:[#allocation8 + $0x140] sm:$0xff]  ;;  %s771_s2 = smov [#allocation11]  }
  0x40   :  { %135 = vmatprep.subr.mxu0 %v133_v1  ;;  %v126_v6 = vld [vmem:[#allocation8 + $0x138] sm:$0xff]  ;;  %v124_v7 = vld [vmem:[#allocation8 + $0x128] sm:$0xff]  ;;  %v123_v8 = vld [vmem:[#allocation8 + $0x120] sm:$0xff]  ;;  %568 = vmatprep.mubr.msk.f32.mxu1 %vm770_vm0, %v769_v0  ;;  %s489_s4 = sshll.u32 %s771_s2, 4  ;;  %s490_s4 = int_to_ptr.vmem [resolvable:$true] %s489_s4 }
  0x41   :  { %136 = vmatpush1.msra.mxu0 %v132_v2  ;;  %v121_v9 = vld [vmem:[#allocation8 + $0x110] sm:$0xff]  ;;  %v120_v10 = vld [vmem:[#allocation8 + $0x108] sm:$0xff]  ;;  %v118_v11 = vld [vmem:[#allocation8 + $0xf8] sm:$0xff]  ;;  %s730_s21 = scalar_lea.vmem %s490_s4, 128  ;;  %p735_p12 = scmp.lt.s32.totalorder %s490_s4, %s490_s4 }
  0x42   :  { %137 = vmatprep.subr.mxu0 %v130_v3  ;;  %v117_v12 = vld [vmem:[#allocation8 + $0xf0] sm:$0xff]  ;;  %v115_v13 = vld [vmem:[#allocation8 + $0xe0] sm:$0xff]  ;;  %v114_v14 = vld [vmem:[#allocation8 + $0xd8] sm:$0xff]  ;;  %p731_p11 = scmp.ne.s32.totalorder %s490_s4, %s730_s21  ;;  %p736_p13 = scmp.lt.s32.totalorder %s730_s21, %s730_s21 }
  0x43   :  { %138 = vmatpush1.msra.mxu0 %v129_v4  ;;  %v112_v15 = vld [vmem:[#allocation8 + $0xc8] sm:$0xff]  ;;  %v111_v16 = vld [vmem:[#allocation8 + $0xc0] sm:$0xff]  ;;  %v109_v17 = vld [vmem:[#allocation8 + $0xb0] sm:$0xff] }
  0x44   :  { %139 = vmatprep.subr.mxu0 %v127_v5  ;;  %v108_v18 = vld [vmem:[#allocation8 + $0xa8] sm:$0xff]  ;;  %v106_v19 = vld [vmem:[#allocation8 + $0x98] sm:$0xff]  ;;  %v105_v20 = vld [vmem:[#allocation8 + $0x90] sm:$0xff]  ;;  %p737_p0 = por %p736_p13, %p735_p12 }
  0x45   :  { %140 = vmatpush1.msra.mxu0 %v126_v6  ;;  %v103_v21 = vld [vmem:[#allocation8 + $0x80] sm:$0xff]  ;;  %v102_v22 = vld [vmem:[#allocation8 + $0x78] sm:$0xff]  ;;  %v100_v23 = vld [vmem:[#allocation8 + $0x68] sm:$0xff] }
  0x46   :  { %141 = vmatprep.subr.mxu0 %v124_v7  ;;  %v99_v24 = vld [vmem:[#allocation8 + $0x60] sm:$0xff]  ;;  %v97_v25 = vld [vmem:[#allocation8 + $0x50] sm:$0xff]  ;;  %v96_v26 = vld [vmem:[#allocation8 + $0x48] sm:$0xff]  ;;  %p738_p1 = pnand %p737_p0, %p731_p11 }
  0x47   :  { %142 = vmatpush1.msra.mxu0 %v123_v8  ;;  %v94_v27 = vld [vmem:[#allocation8 + $0x38] sm:$0xff]  ;;  %v93_v28 = vld [vmem:[#allocation8 + $0x30] sm:$0xff]  ;;  %v91_v29 = vld [vmem:[#allocation8 + $0x20] sm:$0xff] }
  0x48   :  { %143 = vmatprep.subr.mxu0 %v121_v9  ;;  %v90_v30 = vld [vmem:[#allocation8 + $0x18] sm:$0xff]  ;;  %v88_v31 = vld [vmem:[#allocation8 + $0x8] sm:$0xff]  ;;  %v87_v32 = vld [vmem:[#allocation8] sm:$0xff] }
  0x49   :  { %144 = vmatpush1.msra.mxu0 %v120_v10  ;;  %v819_v33 = vld [vmem:[#allocation5] sm:$0xff]  ;;  %v306_v35 = vld [vmem:[#allocation7 + $0xf0] sm:$0xff]  ;;  %v305_v36 = vld [vmem:[#allocation7 + $0xe8] sm:$0xff] }
  0x4a   :  { %145 = vmatprep.subr.mxu0 %v118_v11  ;;  %v307_v34 = vld [vmem:[#allocation7 + $0xf8] sm:$0xff]  ;;  %v304_v37 = vld [vmem:[#allocation7 + $0xe0] sm:$0xff]  ;;  %v302_v39 = vld [vmem:[#allocation7 + $0xd0] sm:$0xff] }
  0x4b   :  { %146 = vmatpush1.msra.mxu0 %v117_v12  ;;  %v303_v38 = vld [vmem:[#allocation7 + $0xd8] sm:$0xff]  ;;  %v301_v40 = vld [vmem:[#allocation7 + $0xc8] sm:$0xff]  ;;  %v300_v41 = vld [vmem:[#allocation7 + $0xc0] sm:$0xff] }
  0x4c   :  { %147 = vmatprep.subr.mxu0 %v115_v13  ;;  %v299_v42 = vld [vmem:[#allocation7 + $0xb8] sm:$0xff]  ;;  %v298_v43 = vld [vmem:[#allocation7 + $0xb0] sm:$0xff]  ;;  %v297_v44 = vld [vmem:[#allocation7 + $0xa8] sm:$0xff] }
  0x4d   :  { %148 = vmatpush1.msra.mxu0 %v114_v14  ;;  %v296_v45 = vld [vmem:[#allocation7 + $0xa0] sm:$0xff]  ;;  %v295_v46 = vld [vmem:[#allocation7 + $0x98] sm:$0xff]  ;;  %v294_v47 = vld [vmem:[#allocation7 + $0x90] sm:$0xff] }
  0x4e   :  { %149 = vmatprep.subr.mxu0 %v112_v15  ;;  %v293_v48 = vld [vmem:[#allocation7 + $0x88] sm:$0xff]  ;;  %v292_v49 = vld [vmem:[#allocation7 + $0x80] sm:$0xff]  ;;  %v291_v50 = vld [vmem:[#allocation7 + $0x78] sm:$0xff] }
  0x4f   :  { %150 = vmatpush1.msra.mxu0 %v111_v16  ;;  %v290_v51 = vld [vmem:[#allocation7 + $0x70] sm:$0xff]  ;;  %v289_v52 = vld [vmem:[#allocation7 + $0x68] sm:$0xff]  ;;  %v288_v53 = vld [vmem:[#allocation7 + $0x60] sm:$0xff] }
  0x50   :  { %151 = vmatprep.subr.mxu0 %v109_v17  ;;  %v287_v54 = vld [vmem:[#allocation7 + $0x58] sm:$0xff]  ;;  %v286_v55 = vld [vmem:[#allocation7 + $0x50] sm:$0xff]  ;;  %v285_v56 = vld [vmem:[#allocation7 + $0x48] sm:$0xff] }
  0x51   :  { %152 = vmatpush1.msra.mxu0 %v108_v18  ;;  %v284_v57 = vld [vmem:[#allocation7 + $0x40] sm:$0xff]  ;;  %v283_v58 = vld [vmem:[#allocation7 + $0x38] sm:$0xff]  ;;  %v282_v59 = vld [vmem:[#allocation7 + $0x30] sm:$0xff] }
  0x52   :  { %153 = vmatprep.subr.mxu0 %v106_v19  ;;  %v281_v60 = vld [vmem:[#allocation7 + $0x28] sm:$0xff]  ;;  %v280_v61 = vld [vmem:[#allocation7 + $0x20] sm:$0xff]  ;;  %v279_v62 = vld [vmem:[#allocation7 + $0x18] sm:$0xff] }
  0x53   :  { %154 = vmatpush1.msra.mxu0 %v105_v20  ;;  %v278_v63 = vld [vmem:[#allocation7 + $0x10] sm:$0xff]  ;;  %v277_v1 = vld [vmem:[#allocation7 + $0x8] sm:$0xff]  ;;  %v276_v2 = vld [vmem:[#allocation7] sm:$0xff] }
  0x54   :  { %155 = vmatprep.subr.mxu0 %v103_v21  ;;  %v823_v3 = vld [vmem:[#allocation2] sm:$0xff]  ;;  %v134_v4 = vld [vmem:[#allocation8 + $0x178] sm:$0xff]  ;;  %v131_v5 = vld [vmem:[#allocation8 + $0x160] sm:$0xff] }
  0x55   :  { %156 = vmatpush1.msra.mxu0 %v102_v22  ;;  %537 = vmatpush3.msra.mxu1 %v134_v4  ;;  %v128_v6 = vld [vmem:[#allocation8 + $0x148] sm:$0xff]  ;;  %v125_v7 = vld [vmem:[#allocation8 + $0x130] sm:$0xff]  ;;  %v122_v8 = vld [vmem:[#allocation8 + $0x118] sm:$0xff] }
  0x56   :  { %157 = vmatprep.subr.mxu0 %v100_v23  ;;  %538 = vmatprep.subr.mxu1 %v769_v0  ;;  %v119_v9 = vld [vmem:[#allocation8 + $0x100] sm:$0xff]  ;;  %v116_v10 = vld [vmem:[#allocation8 + $0xe8] sm:$0xff]  ;;  %v113_v11 = vld [vmem:[#allocation8 + $0xd0] sm:$0xff] }
  0x57   :  { %158 = vmatpush1.msra.mxu0 %v99_v24  ;;  %539 = vmatpush3.msra.mxu1 %v131_v5  ;;  %v110_v12 = vld [vmem:[#allocation8 + $0xb8] sm:$0xff]  ;;  %v107_v13 = vld [vmem:[#allocation8 + $0xa0] sm:$0xff]  ;;  %v104_v14 = vld [vmem:[#allocation8 + $0x88] sm:$0xff] }
  0x58   :  { %159 = vmatprep.subr.mxu0 %v97_v25  ;;  %540 = vmatprep.subr.mxu1 %v769_v0  ;;  %v101_v15 = vld [vmem:[#allocation8 + $0x70] sm:$0xff]  ;;  %v98_v16 = vld [vmem:[#allocation8 + $0x58] sm:$0xff]  ;;  %v95_v17 = vld [vmem:[#allocation8 + $0x40] sm:$0xff] }
  0x59   :  { %160 = vmatpush1.msra.mxu0 %v96_v26  ;;  %541 = vmatpush3.msra.mxu1 %v128_v6  ;;  %v92_v18 = vld [vmem:[#allocation8 + $0x28] sm:$0xff]  ;;  %v89_v19 = vld [vmem:[#allocation8 + $0x10] sm:$0xff]  ;;  %v407_v20 = vld [vmem:[#allocation10 + $0x78] sm:$0xff] }
  0x5a   :  { %161 = vmatprep.subr.mxu0 %v94_v27  ;;  %542 = vmatprep.subr.mxu1 %v769_v0  ;;  %v406_v21 = vld [vmem:[#allocation10 + $0x70] sm:$0xff]  ;;  %v405_v22 = vld [vmem:[#allocation10 + $0x68] sm:$0xff]  ;;  %v404_v23 = vld [vmem:[#allocation10 + $0x60] sm:$0xff] }
  0x5b   :  { %162 = vmatpush1.msra.mxu0 %v93_v28  ;;  %543 = vmatpush3.msra.mxu1 %v125_v7  ;;  %v403_v24 = vld [vmem:[#allocation10 + $0x58] sm:$0xff]  ;;  %v402_v25 = vld [vmem:[#allocation10 + $0x50] sm:$0xff]  ;;  %v401_v26 = vld [vmem:[#allocation10 + $0x48] sm:$0xff] }
  0x5c   :  { %163 = vmatprep.subr.mxu0 %v91_v29  ;;  %544 = vmatprep.subr.mxu1 %v769_v0  ;;  %v400_v27 = vld [vmem:[#allocation10 + $0x40] sm:$0xff]  ;;  %v399_v28 = vld [vmem:[#allocation10 + $0x38] sm:$0xff]  ;;  %v398_v29 = vld [vmem:[#allocation10 + $0x30] sm:$0xff] }
  0x5d   :  { %164 = vmatpush1.msra.mxu0 %v90_v30  ;;  %545 = vmatpush3.msra.mxu1 %v122_v8  ;;  %v397_v30 = vld [vmem:[#allocation10 + $0x28] sm:$0xff] }
  0x5e   :  { %165 = vmatprep.subr.mxu0 %v88_v31  ;;  %546 = vmatprep.subr.mxu1 %v769_v0  ;;  %v396_v31 = vld [vmem:[#allocation10 + $0x20] sm:$0xff] }
  0x5f   :  { %166 = vmatpush1.msra.mxu0 %v87_v32  ;;  %547 = vmatpush3.msra.mxu1 %v119_v9  ;;  %v395_v32 = vld [vmem:[#allocation10 + $0x18] sm:$0xff] }
  0x60   :  { %200 = vmatmul.mubr.f32.vlgmr.msra.gmra.mxu0 %v819_v33  ;;  %308 = vmatprep.subr.mxu0 %v307_v34  ;;  %v393_v34 = vld [vmem:[#allocation10 + $0x8] sm:$0xff] }
  0x61   :  { %309 = vmatpush1.msra.mxu0 %v306_v35  ;;  %372 = vmatprep.mubr.f32.mxu0 %v769_v0  ;;  %v392_v35 = vld [vmem:[#allocation10] sm:$0xff] }
  0x62   :  { %310 = vmatprep.subr.mxu0 %v305_v36  ;;  %548 = vmatprep.subr.mxu1 %v769_v0 }
  0x63   :  { %311 = vmatpush1.msra.mxu0 %v304_v37  ;;  %549 = vmatpush3.msra.mxu1 %v116_v10 }
  0x64   :  { %312 = vmatprep.subr.mxu0 %v303_v38  ;;  %550 = vmatprep.subr.mxu1 %v769_v0 }
  0x65   :  { %313 = vmatpush1.msra.mxu0 %v302_v39  ;;  %551 = vmatpush3.msra.mxu1 %v113_v11 }
  0x66   :  { %314 = vmatprep.subr.mxu0 %v301_v40  ;;  %552 = vmatprep.subr.mxu1 %v769_v0 }
  0x67   :  { %315 = vmatpush1.msra.mxu0 %v300_v41  ;;  %553 = vmatpush3.msra.mxu1 %v110_v12 }
  0x68   :  { %316 = vmatprep.subr.mxu0 %v299_v42  ;;  %554 = vmatprep.subr.mxu1 %v769_v0 }
  0x69   :  { %317 = vmatpush1.msra.mxu0 %v298_v43  ;;  %555 = vmatpush3.msra.mxu1 %v107_v13 }
  0x6a   :  { %318 = vmatprep.subr.mxu0 %v297_v44  ;;  %556 = vmatprep.subr.mxu1 %v769_v0 }
  0x6b   :  { %319 = vmatpush1.msra.mxu0 %v296_v45  ;;  %557 = vmatpush3.msra.mxu1 %v104_v14 }
  0x6c   :  { %320 = vmatprep.subr.mxu0 %v295_v46  ;;  %558 = vmatprep.subr.mxu1 %v769_v0 }
  0x6d   :  { %321 = vmatpush1.msra.mxu0 %v294_v47  ;;  %559 = vmatpush3.msra.mxu1 %v101_v15 }
  0x6e   :  { %322 = vmatprep.subr.mxu0 %v293_v48  ;;  %560 = vmatprep.subr.mxu1 %v769_v0 }
  0x6f   :  { %323 = vmatpush1.msra.mxu0 %v292_v49  ;;  %561 = vmatpush3.msra.mxu1 %v98_v16 }
  0x70   :  { %324 = vmatprep.subr.mxu0 %v291_v50  ;;  %562 = vmatprep.subr.mxu1 %v769_v0 }
  0x71   :  { %325 = vmatpush1.msra.mxu0 %v290_v51  ;;  %563 = vmatpush3.msra.mxu1 %v95_v17 }
  0x72   :  { %326 = vmatprep.subr.mxu0 %v289_v52  ;;  %564 = vmatprep.subr.mxu1 %v769_v0 }
  0x73   :  { %327 = vmatpush1.msra.mxu0 %v288_v53  ;;  %565 = vmatpush3.msra.mxu1 %v92_v18 }
  0x74   :  { %328 = vmatprep.subr.mxu0 %v287_v54  ;;  %566 = vmatprep.subr.mxu1 %v769_v0 }
  0x75   :  { %329 = vmatpush1.msra.mxu0 %v286_v55  ;;  %567 = vmatpush3.msra.mxu1 %v89_v19 }
  0x76   :  { %330 = vmatprep.subr.mxu0 %v285_v56  ;;  %569 = vmatmul.mubr.f32.vlgmr.msra.gmra.mxu1 %v819_v33  ;;  %v394_v33 = vld [vmem:[#allocation10 + $0x10] sm:$0xff] }
  0x77   :  { %331 = vmatpush1.msra.mxu0 %v284_v57  ;;  %571 = vmatprep.subr.mxu1 %v769_v0 }
  0x78   :  { %332 = vmatprep.subr.mxu0 %v283_v58  ;;  %603 = vmatprep.mubr.msk.f32.mxu1 %vm770_vm0, %v769_v0 }
  0x79   :  { %333 = vmatpush1.msra.mxu0 %v282_v59  ;;  %572 = vmatpush3.msra.mxu1 %v407_v20 }
  0x7a   :  { %334 = vmatprep.subr.mxu0 %v281_v60  ;;  %573 = vmatprep.subr.mxu1 %v769_v0 }
  0x7b   :  { %335 = vmatpush1.msra.mxu0 %v280_v61  ;;  %574 = vmatpush3.msra.mxu1 %v406_v21 }
  0x7c   :  { %336 = vmatprep.subr.mxu0 %v279_v62  ;;  %575 = vmatprep.subr.mxu1 %v769_v0 }
  0x7d   :  { %337 = vmatpush1.msra.mxu0 %v278_v63  ;;  %576 = vmatpush3.msra.mxu1 %v405_v22 }
  0x7e   :  { %338 = vmatprep.subr.mxu0 %v277_v1  ;;  %577 = vmatprep.subr.mxu1 %v769_v0 }
  0x7f   :  { %339 = vmatpush1.msra.mxu0 %v276_v2  ;;  %578 = vmatpush3.msra.mxu1 %v404_v23 }
  0x80   :  { %373 = vmatmul.mubr.f32.vlgmr.msra.gmra.mxu0 %v823_v3  ;;  %579 = vmatprep.subr.mxu1 %v769_v0 }
  0x81   :  { %580 = vmatpush3.msra.mxu1 %v403_v24 }
  0x82   :  { %581 = vmatprep.subr.mxu1 %v769_v0 }
  0x83   :  { %582 = vmatpush3.msra.mxu1 %v402_v25 }
  0x84   :  { %583 = vmatprep.subr.mxu1 %v769_v0 }
  0x85   :  { %584 = vmatpush3.msra.mxu1 %v401_v26 }
  0x86   :  { %585 = vmatprep.subr.mxu1 %v769_v0 }
  0x87   :  { %586 = vmatpush3.msra.mxu1 %v400_v27 }
  0x88   :  { %587 = vmatprep.subr.mxu1 %v769_v0 }
  0x89   :  { %588 = vmatpush3.msra.mxu1 %v399_v28 }
  0x8a   :  { %589 = vmatprep.subr.mxu1 %v769_v0 }
  0x8b   :  { %590 = vmatpush3.msra.mxu1 %v398_v29 }
  0x8c   :  { %591 = vmatprep.subr.mxu1 %v769_v0 }
  0x8d   :  { %592 = vmatpush3.msra.mxu1 %v397_v30 }
  0x8e   :  { %593 = vmatprep.subr.mxu1 %v769_v0 }
  0x8f   :  { %594 = vmatpush3.msra.mxu1 %v396_v31 }
  0x90   :  { %595 = vmatprep.subr.mxu1 %v769_v0 }
  0x91   :  { %596 = vmatpush3.msra.mxu1 %v395_v32 }
  0x92   :  { %597 = vmatprep.subr.mxu1 %v769_v0 }
  0x93   :  { %598 = vmatpush3.msra.mxu1 %v394_v33 }
  0x94   :  { %599 = vmatprep.subr.mxu1 %v769_v0 }
  0x95   :  { %600 = vmatpush3.msra.mxu1 %v393_v34 }
  0x96   :  { %601 = vmatprep.subr.mxu1 %v769_v0 }
  0x97   :  { %602 = vmatpush3.msra.mxu1 %v392_v35 }
 0x120   :  { %v201_v36 = vpop.f32.mrf.mxu0 }
 0x122   :  { %v203_v37 = vpop.f32.mrf.mxu0 }
 0x136   :  { %v272_v47 = vpop.f32.mrf.mxu1 }
 0x138   :  { %v570_v48 = vpop.f32.mrf.mxu1 }
 0x140   :  { %v374_v38 = vpop.f32.mrf.mxu0 }
 0x141   :  { %v375_v39 = vadd.f32 %v374_v38, %v201_v36 }
 0x142   :  { %v376_v40 = vpop.f32.mrf.mxu0 }
 0x143   :  { %v377_v41 = vadd.f32 %v376_v40, %v203_v37  ;;  %v500_v49 = vmul.f32 -1.442695, %v375_v39 }
 0x145   :  { %v501_v42 = vmul.f32 -1.442695, %v377_v41 }
 0x147   :  { %620 = vpow2.f32 %v501_v42 }
 0x154   :  { %v621_v43 = vpop.eup %620 }
 0x155   :  { %v386_v44 = vadd.f32 1.0, %v621_v43 }
 0x157   :  { %622 = vrcp.f32 %v386_v44 }
 0x158   :  { %624 = vpow2.f32 %v500_v49 }
 0x164   :  { %v623_v45 = vpop.eup %622 }
 0x165   :  { %v391_v46 = vmul.f32 %v623_v45, %v823_v3  ;;  %v625_v0 = vpop.eup %624 }
 0x166   :  { %v385_v51 = vadd.f32 1.0, %v625_v0 }
 0x167   :  { %604 = vmatmul.mubr.f32.vlgmr.msra.gmra.mxu1 %v391_v46 }
 0x227   :  { %v474_v50 = vpop.f32.mrf.mxu1 }
 0x228   :  { %v475_v52 = vadd.f32 %v474_v50, %v272_v47 }
 0x229   :  { %v605_v53 = vpop.f32.mrf.mxu1 }
 0x22a   :  { %626 = vtanh.f32 %v475_v52 }
 0x22b   :  { %628 = vrcp.f32 %v385_v51 }
 0x237   :  { %v627_v54 = vpop.eup %626 }
 0x238   :  { %v479_v55 = vsub.f32 %v627_v54, %v823_v3  ;;  %v629_v56 = vpop.eup %628 }
 0x23a   :  { %v480_v57 = vmul.f32 %v629_v56, %v479_v55 }
 0x23c   :  { %v481_v58 = vadd.f32 %v480_v57, %v823_v3 }
 0x23e   :  { %482 = vst [vmem:[#allocation11] sm:$0xff] %v481_v58 }
 0x23f   :  { %741 = shalt.err (!%p738_p1)
}
 0x240   :  { %492 = dma.vmem_to_hbm [thread:$0]  %s490_s4, 128, %s871_s5, [#allocation4]  }
 0x241   :  { %756 = dma.done.wait [#allocation4], 128  }
 0x242   :  { %757 = vsyncadd [#allocation4], 4294967168 }
 0x243   :  { %496 = vsyncpa [#allocation3], 1 }
 0x244   :  { %497 = vsyncpa [#allocation6], 1 }
 0x245   :  { %498 = vsyncpa [#allocation9], 1 }
 0x246   :  { %499 = vsyncpa [#allocation4], 1 }

</bundles_post_ra>
